<compile_context>
chip_gen: v7x
topology: tpu7x:2x2x1
jax: 0.10.0
libtpu: 0.0.40
codegen_flags: <defaults>
</compile_context>

<pallas_src>
from collections import OrderedDict

import jax
import jax.numpy as jnp
from jax.experimental import pallas as pl
from jax.experimental.pallas import tpu as pltpu

# ----------------------------- model dims ----------------------------------
C_IN = 4          # input image channels (synthetic small)
C_FEAT = 32       # backbone ("body") feature channels
C_BEV = 32        # BEV ("transformer") feature channels
NUM_CLASSES = 8   # semantic-head classes (stuff + thing)
NUM_VF = 3        # vertical / flat / other (front-view mask head)
NUM_ANCHORS = 1   # RPN anchors per location

# ----------------- fused-head / packed-output layout ------------------------
# All channel groups are padded to multiples of 8 so every in-kernel store is a
# sublane-aligned, full-lane-width vst.
VF_PAD = 8                                   # vf logits slot (3 valid + 5 pad)
FUSED1 = C_BEV + VF_PAD                      # transformer + vf fused head: 40
OFF_VR = 0                                   # offsets inside fused BEV-heads
OFF_FR = 1
OFF_SEM = 2
OFF_OBJ = OFF_SEM + NUM_CLASSES              # 10
OFF_BBX = OFF_OBJ + NUM_ANCHORS              # 11
FUSED2_RAW = OFF_BBX + 4 * NUM_ANCHORS       # 15 valid rows
FUSED2 = 16                                  # rounded to sublane multiple

# packed output slab row offsets ([C_OUT, N]; N on the lane axis)
O_BEV = 0                                    # rows  0:32  BEV features (ReLU)
O_VF = C_BEV                                 # rows 32:40  vf logits (3 valid)
O_HEADS = FUSED1                             # rows 40:56  fused BEV-head logits
C_OUT = FUSED1 + FUSED2                      # 56


# ------------------------------ Pallas kernel -------------------------------
def _panoptic_heads_kernel(x_ref,
                           wb_ref, bb_ref,     # body (backbone) 1x1 conv
                           w1_ref, b1_ref,     # fused transformer + vf head
                           w2_ref, b2_ref,     # fused BEV heads (vr/fr/sem/obj/bbx)
                           out_ref):
    x = x_ref[...]                                                  # [C_IN, T]

    # body: per-pixel projection (1x1 conv) + ReLU                -> [C_FEAT, T]
    feat = jnp.maximum(
        jnp.dot(wb_ref[...], x, preferred_element_type=jnp.float32) + bb_ref[...],
        0.0)

    # fused transformer (front->BEV) + vertical/flat logits head  -> [FUSED1, T]
    y1 = jnp.dot(w1_ref[...], feat,
                 preferred_element_type=jnp.float32) + b1_ref[...]
    bev = jnp.maximum(y1[:C_BEV, :], 0.0)                           # [C_BEV, T]

    # fused BEV heads: v-region, f-region, semantic, RPN obj, RPN bbx
    y2 = jnp.dot(w2_ref[...], bev,
                 preferred_element_type=jnp.float32) + b2_ref[...]  # [FUSED2, T]

    # one packed, lane-dense output slab; all slices sublane-aligned
    out_ref[O_BEV:O_BEV + C_BEV, :] = bev
    out_ref[O_VF:O_VF + VF_PAD, :] = y1[C_BEV:, :]   # vf logits (+zero pad rows)
    out_ref[O_HEADS:O_HEADS + FUSED2, :] = y2


# ----------------------------- parameter init -------------------------------
def init_params(key):
    def w(k, shape, scale=0.1):
        return (scale * jax.random.normal(k, shape)).astype(jnp.float32)

    ks = jax.random.split(key, 8)
    # per-head weights in [Cout, Cin] (lane-dense / transposed) orientation
    w_body = w(ks[0], (C_FEAT, C_IN))
    w_tr = w(ks[1], (C_BEV, C_FEAT))
    w_vf = w(ks[2], (NUM_VF, C_FEAT))
    w_vr = w(ks[3], (1, C_BEV))
    w_fr = w(ks[4], (1, C_BEV))
    w_sem = w(ks[5], (NUM_CLASSES, C_BEV))
    w_obj = w(ks[6], (NUM_ANCHORS, C_BEV))
    w_bbx = w(ks[7], (4 * NUM_ANCHORS, C_BEV))

    # fuse transformer + vf (both consume the backbone feature)
    w_h1 = jnp.zeros((FUSED1, C_FEAT), jnp.float32)
    w_h1 = (w_h1.at[:C_BEV].set(w_tr)
                 .at[C_BEV:C_BEV + NUM_VF].set(w_vf))
    b_h1 = jnp.zeros((FUSED1, 1), jnp.float32)

    # fuse the five BEV-consumer heads
    w_h2 = jnp.zeros((FUSED2, C_BEV), jnp.float32)
    w_h2 = (w_h2.at[OFF_VR:OFF_VR + 1].set(w_vr)
                 .at[OFF_FR:OFF_FR + 1].set(w_fr)
                 .at[OFF_SEM:OFF_SEM + NUM_CLASSES].set(w_sem)
                 .at[OFF_OBJ:OFF_OBJ + NUM_ANCHORS].set(w_obj)
                 .at[OFF_BBX:OFF_BBX + 4 * NUM_ANCHORS].set(w_bbx))
    b_h2 = jnp.zeros((FUSED2, 1), jnp.float32)

    return {
        "w_body": w_body, "b_body": jnp.zeros((C_FEAT, 1), jnp.float32),
        "w_h1": w_h1, "b_h1": b_h1,
        "w_h2": w_h2, "b_h2": b_h2,
    }


# ------------------------------ tiling helper --------------------------------
def _tiling(n):
    """Pick a large lane tile and the padded pixel count.

    Big tiles amortise the ~0.35 us/step pipeline overhead; the grid is kept
    >= 2 steps so both v7x TensorCores receive work under "parallel" semantics.
    Working set is tiny (< 1 MiB per buffered tile), far below VMEM limits.
    """
    if n >= 4096:
        tile = 2048
    elif n >= 1024:
        tile = 512
    else:
        tile = 256
    n_pad = ((n + tile - 1) // tile) * tile
    if n_pad // tile < 2:
        n_pad = 2 * tile
    return tile, n_pad


# ------------------------------ kernel wrapper -------------------------------
def _run_heads(x_cn, params, tile):
    """x_cn: [C_IN, n_pad] float32 (pixels on the lane axis)."""
    n_pad = x_cn.shape[1]
    grid = (n_pad // tile,)

    param_order = [
        params["w_body"], params["b_body"],
        params["w_h1"], params["b_h1"],
        params["w_h2"], params["b_h2"],
    ]

    in_specs = ([pl.BlockSpec((C_IN, tile), lambda i: (0, i))] +
                [pl.BlockSpec(p.shape, lambda i: (0, 0)) for p in param_order])
    out_spec = pl.BlockSpec((C_OUT, tile), lambda i: (0, i))

    return pl.pallas_call(
        _panoptic_heads_kernel,
        out_shape=jax.ShapeDtypeStruct((C_OUT, n_pad), jnp.float32),
        grid_spec=pltpu.PrefetchScalarGridSpec(
            num_scalar_prefetch=0,
            grid=grid,
            in_specs=in_specs,
            out_specs=out_spec,
        ),
        compiler_params=pltpu.CompilerParams(
            dimension_semantics=("parallel",)),
    )(x_cn, *param_order)


def _slab_rows_to_nchw(slab, row_start, c, B, H, W):
    # slab: [C_OUT, n_pad] -> take rows [row_start, row_start+c), first B*H*W
    # pixel columns, reshape to NCHW (pure glue).
    n = B * H * W
    x = slab[row_start:row_start + c, :n]
    return jnp.transpose(x.reshape(c, B, H, W), (1, 0, 2, 3))


# ------------------------ PanopticBevNet (forward) ---------------------------
class PanopticBevNetPallas:
    """Prediction-path forward of PanopticBevNet with the whole per-pixel head
    stack fused into a single lane-dense Pallas TPU kernel."""

    def __init__(self, params, num_stuff=4):
        self.params = params
        self.num_stuff = num_stuff

    def forward(self, img):
        # img: [B, C_IN, H, W] (NCHW, matching the PyTorch convention)
        B, C, H, W = img.shape
        assert C == C_IN
        N = B * H * W
        tile, n_pad = _tiling(N)

        # NCHW -> [C_IN, N]: channels on sublanes, pixels on lanes (lane-dense
        # input loads), plus lane-axis zero pad up to the tiled length.
        x_cn = jnp.transpose(img, (1, 0, 2, 3)).reshape(C_IN, N)
        if n_pad > N:
            x_cn = jnp.pad(x_cn, ((0, 0), (0, n_pad - N)))

        slab = _run_heads(x_cn, self.params, tile)          # [C_OUT, n_pad]

        ms_bev = _slab_rows_to_nchw(slab, O_BEV, C_BEV, B, H, W)
        vf_logits = _slab_rows_to_nchw(slab, O_VF, NUM_VF, B, H, W)
        v_region_logits = _slab_rows_to_nchw(slab, O_HEADS + OFF_VR, 1, B, H, W)
        f_region_logits = _slab_rows_to_nchw(slab, O_HEADS + OFF_FR, 1, B, H, W)
        sem_logits = _slab_rows_to_nchw(slab, O_HEADS + OFF_SEM, NUM_CLASSES,
                                        B, H, W)
        obj_logits = _slab_rows_to_nchw(slab, O_HEADS + OFF_OBJ, NUM_ANCHORS,
                                        B, H, W)
        bbx_logits = _slab_rows_to_nchw(slab, O_HEADS + OFF_BBX,
                                        4 * NUM_ANCHORS, B, H, W)

        # semantic prediction: per-pixel argmax done wrapper-side (cheap XLA op,
        # avoids a width-1 int32 output stream from the kernel)
        sem_pred = jnp.argmax(sem_logits, axis=1).astype(jnp.int32)   # [B, H, W]

        # TODO(synk): RPN proposal decoding/NMS, ROI-align instance head and
        # panoptic fusion are data-dependent gather/sort ops with no clean
        # Pallas equivalent; left as None like the no-prediction branch.
        bbx_pred, cls_pred, obj_pred, msk_pred = (None, None, None, None)

        loss = OrderedDict()
        loss["obj_loss"] = None
        loss["bbx_loss"] = None
        loss["roi_cls_loss"] = None
        loss["roi_bbx_loss"] = None
        loss["roi_msk_loss"] = None
        loss["sem_loss"] = None
        loss["vf_loss"] = None
        loss["v_region_loss"] = None
        loss["f_region_loss"] = None
        loss["po_loss"] = None

        result = OrderedDict()
        result["bbx_pred"] = bbx_pred
        result["cls_pred"] = cls_pred
        result["obj_pred"] = obj_pred
        result["msk_pred"] = msk_pred
        result["sem_pred"] = sem_pred
        result["sem_logits"] = sem_logits
        result["vf_logits"] = [vf_logits]
        result["v_region_logits"] = [v_region_logits]
        result["f_region_logits"] = [f_region_logits]
        result["ms_bev"] = ms_bev
        result["rpn_obj_logits"] = obj_logits
        result["rpn_bbx_logits"] = bbx_logits

        stats = OrderedDict()
        stats["sem_conf"] = None
        return loss, result, stats


# ---------------------------------- main -------------------------------------
if __name__ == "__main__":
    key = jax.random.PRNGKey(0)
    k_param, k_img = jax.random.split(key)

    params = init_params(k_param)
    net = PanopticBevNetPallas(params, num_stuff=4)

    B, H, W = 2, 16, 16
    img = jax.random.normal(k_img, (B, C_IN, H, W), dtype=jnp.float32)

    loss, result, stats = net.forward(img)

    # block on every produced array
    jax.block_until_ready(
        [v for v in jax.tree_util.tree_leaves(result) if v is not None])

    # shape sanity checks
    assert result["sem_logits"].shape == (B, NUM_CLASSES, H, W)
    assert result["sem_pred"].shape == (B, H, W)
    assert result["vf_logits"][0].shape == (B, NUM_VF, H, W)
    assert result["v_region_logits"][0].shape == (B, 1, H, W)
    assert result["f_region_logits"][0].shape == (B, 1, H, W)
    assert result["ms_bev"].shape == (B, C_BEV, H, W)
    assert result["rpn_obj_logits"].shape == (B, NUM_ANCHORS, H, W)
    assert result["rpn_bbx_logits"].shape == (B, 4 * NUM_ANCHORS, H, W)

    # numerical reference check (pure JAX, row-major orientation) for the
    # semantic head path through the fused kernel
    x_rows = jnp.transpose(img, (0, 2, 3, 1)).reshape(-1, C_IN)       # [N, C_IN]
    feat_r = jnp.maximum(x_rows @ params["w_body"].T + params["b_body"].T, 0.0)
    bev_r = jnp.maximum(
        feat_r @ params["w_h1"][:C_BEV].T + params["b_h1"][:C_BEV].T, 0.0)
    sem_r = (bev_r @ params["w_h2"][OFF_SEM:OFF_SEM + NUM_CLASSES].T
             + params["b_h2"][OFF_SEM:OFF_SEM + NUM_CLASSES].T)
    sem_r = jnp.transpose(sem_r.reshape(B, H, W, NUM_CLASSES), (0, 3, 1, 2))
    assert jnp.allclose(result["sem_logits"], sem_r, atol=1e-3, rtol=1e-3)

    print("KERNEL_OK")
</pallas_src>

<mosaic_0001>
module attributes {stable_mosaic.version = 11 : i64} {
  func.func @_panoptic_heads_kernel(%arg0: i32, %arg1: memref<4x256xf32, #tpu.memory_space<vmem>>, %arg2: memref<32x4xf32, #tpu.memory_space<vmem>>, %arg3: memref<32x1xf32, #tpu.memory_space<vmem>>, %arg4: memref<40x32xf32, #tpu.memory_space<vmem>>, %arg5: memref<40x1xf32, #tpu.memory_space<vmem>>, %arg6: memref<16x32xf32, #tpu.memory_space<vmem>>, %arg7: memref<16x1xf32, #tpu.memory_space<vmem>>, %arg8: memref<56x256xf32, #tpu.memory_space<vmem>>) attributes {dimension_semantics = [#tpu.dimension_semantics<parallel>], iteration_bounds = array<i64: 2>, scalar_prefetch = 0 : i64, scratch_operands = 0 : i64, tpu.core_type = #tpu.core_type<tc>, window_params = [{transform_indices = @transform_0, window_bounds = array<i64: 4, 256>}, {pipeline_mode = #tpu.pipeline_mode<synchronous>, transform_indices = @transform_1, window_bounds = array<i64: 32, 4>}, {pipeline_mode = #tpu.pipeline_mode<synchronous>, transform_indices = @transform_2, window_bounds = array<i64: 32, 1>}, {pipeline_mode = #tpu.pipeline_mode<synchronous>, transform_indices = @transform_3, window_bounds = array<i64: 40, 32>}, {pipeline_mode = #tpu.pipeline_mode<synchronous>, transform_indices = @transform_4, window_bounds = array<i64: 40, 1>}, {pipeline_mode = #tpu.pipeline_mode<synchronous>, transform_indices = @transform_5, window_bounds = array<i64: 16, 32>}, {pipeline_mode = #tpu.pipeline_mode<synchronous>, transform_indices = @transform_6, window_bounds = array<i64: 16, 1>}, {transform_indices = @transform_7, window_bounds = array<i64: 56, 256>}]} {
    %c0 = arith.constant 0 : index
    %c0_0 = arith.constant 0 : index
    %0 = vector.load %arg1[%c0, %c0_0] : memref<4x256xf32, #tpu.memory_space<vmem>>, vector<4x256xf32>
    %c0_1 = arith.constant 0 : index
    %c0_2 = arith.constant 0 : index
    %1 = vector.load %arg2[%c0_1, %c0_2] : memref<32x4xf32, #tpu.memory_space<vmem>>, vector<32x4xf32>
    %cst = arith.constant dense<0.000000e+00> : vector<32x256xf32>
    %2 = tpu.matmul %1, %0, %cst {dimension_numbers = #tpu.dot_dimension_numbers<[1], [0], [0], [1], [0, 0, 1, 1], [], []>} : vector<32x4xf32>, vector<4x256xf32>, vector<32x256xf32> -> vector<32x256xf32>
    %c0_3 = arith.constant 0 : index
    %c0_4 = arith.constant 0 : index
    %3 = vector.load %arg3[%c0_3, %c0_4] : memref<32x1xf32, #tpu.memory_space<vmem>>, vector<32x1xf32>
    %4 = vector.broadcast %3 : vector<32x1xf32> to vector<32x256xf32>
    %5 = arith.addf %2, %4 : vector<32x256xf32>
    %cst_5 = arith.constant 0.000000e+00 : f32
    %6 = vector.broadcast %cst_5 : f32 to vector<32x256xf32>
    %7 = arith.maximumf %5, %6 : vector<32x256xf32>
    %c0_6 = arith.constant 0 : index
    %c0_7 = arith.constant 0 : index
    %8 = vector.load %arg4[%c0_6, %c0_7] : memref<40x32xf32, #tpu.memory_space<vmem>>, vector<40x32xf32>
    %cst_8 = arith.constant dense<0.000000e+00> : vector<40x256xf32>
    %9 = tpu.matmul %8, %7, %cst_8 {dimension_numbers = #tpu.dot_dimension_numbers<[1], [0], [0], [1], [0, 0, 1, 1], [], []>} : vector<40x32xf32>, vector<32x256xf32>, vector<40x256xf32> -> vector<40x256xf32>
    %c0_9 = arith.constant 0 : index
    %c0_10 = arith.constant 0 : index
    %10 = vector.load %arg5[%c0_9, %c0_10] : memref<40x1xf32, #tpu.memory_space<vmem>>, vector<40x1xf32>
    %11 = vector.broadcast %10 : vector<40x1xf32> to vector<40x256xf32>
    %12 = arith.addf %9, %11 : vector<40x256xf32>
    %13 = vector.extract_strided_slice %12 {offsets = [0, 0], sizes = [32, 256], strides = [1, 1]} : vector<40x256xf32> to vector<32x256xf32>
    %cst_11 = arith.constant 0.000000e+00 : f32
    %14 = vector.broadcast %cst_11 : f32 to vector<32x256xf32>
    %15 = arith.maximumf %13, %14 : vector<32x256xf32>
    %c0_12 = arith.constant 0 : index
    %c0_13 = arith.constant 0 : index
    %16 = vector.load %arg6[%c0_12, %c0_13] : memref<16x32xf32, #tpu.memory_space<vmem>>, vector<16x32xf32>
    %cst_14 = arith.constant dense<0.000000e+00> : vector<16x256xf32>
    %17 = tpu.matmul %16, %15, %cst_14 {dimension_numbers = #tpu.dot_dimension_numbers<[1], [0], [0], [1], [0, 0, 1, 1], [], []>} : vector<16x32xf32>, vector<32x256xf32>, vector<16x256xf32> -> vector<16x256xf32>
    %c0_15 = arith.constant 0 : index
    %c0_16 = arith.constant 0 : index
    %18 = vector.load %arg7[%c0_15, %c0_16] : memref<16x1xf32, #tpu.memory_space<vmem>>, vector<16x1xf32>
    %19 = vector.broadcast %18 : vector<16x1xf32> to vector<16x256xf32>
    %20 = arith.addf %17, %19 : vector<16x256xf32>
    %c0_17 = arith.constant 0 : index
    %c0_18 = arith.constant 0 : index
    %21 = vector.load %arg8[%c0_17, %c0_18] : memref<56x256xf32, #tpu.memory_space<vmem>>, vector<32x256xf32>
    tpu.vector_store %arg8[%c0_17, %c0_18], %15 {strides = array<i32>} : memref<56x256xf32, #tpu.memory_space<vmem>>, vector<32x256xf32>,
    %22 = vector.extract_strided_slice %12 {offsets = [32, 0], sizes = [8, 256], strides = [1, 1]} : vector<40x256xf32> to vector<8x256xf32>
    %c32 = arith.constant 32 : index
    %c0_19 = arith.constant 0 : index
    %23 = vector.load %arg8[%c32, %c0_19] : memref<56x256xf32, #tpu.memory_space<vmem>>, vector<8x256xf32>
    tpu.vector_store %arg8[%c32, %c0_19], %22 {strides = array<i32>} : memref<56x256xf32, #tpu.memory_space<vmem>>, vector<8x256xf32>,
    %c40 = arith.constant 40 : index
    %c0_20 = arith.constant 0 : index
    %24 = vector.load %arg8[%c40, %c0_20] : memref<56x256xf32, #tpu.memory_space<vmem>>, vector<16x256xf32>
    tpu.vector_store %arg8[%c40, %c0_20], %20 {strides = array<i32>} : memref<56x256xf32, #tpu.memory_space<vmem>>, vector<16x256xf32>,
    return
  }
  func.func @transform_0(%arg0: i32) -> (i32, i32) {
    %c0_i32 = arith.constant 0 : i32
    %c0_i32_0 = arith.constant 0 : i32
    return %c0_i32, %arg0 : i32, i32
  }
  func.func @transform_1(%arg0: i32) -> (i32, i32) {
    %c0_i32 = arith.constant 0 : i32
    %c0_i32_0 = arith.constant 0 : i32
    %c0_i32_1 = arith.constant 0 : i32
    return %c0_i32, %c0_i32_0 : i32, i32
  }
  func.func @transform_2(%arg0: i32) -> (i32, i32) {
    %c0_i32 = arith.constant 0 : i32
    %c0_i32_0 = arith.constant 0 : i32
    %c0_i32_1 = arith.constant 0 : i32
    return %c0_i32, %c0_i32_0 : i32, i32
  }
  func.func @transform_3(%arg0: i32) -> (i32, i32) {
    %c0_i32 = arith.constant 0 : i32
    %c0_i32_0 = arith.constant 0 : i32
    %c0_i32_1 = arith.constant 0 : i32
    return %c0_i32, %c0_i32_0 : i32, i32
  }
  func.func @transform_4(%arg0: i32) -> (i32, i32) {
    %c0_i32 = arith.constant 0 : i32
    %c0_i32_0 = arith.constant 0 : i32
    %c0_i32_1 = arith.constant 0 : i32
    return %c0_i32, %c0_i32_0 : i32, i32
  }
  func.func @transform_5(%arg0: i32) -> (i32, i32) {
    %c0_i32 = arith.constant 0 : i32
    %c0_i32_0 = arith.constant 0 : i32
    %c0_i32_1 = arith.constant 0 : i32
    return %c0_i32, %c0_i32_0 : i32, i32
  }
  func.func @transform_6(%arg0: i32) -> (i32, i32) {
    %c0_i32 = arith.constant 0 : i32
    %c0_i32_0 = arith.constant 0 : i32
    %c0_i32_1 = arith.constant 0 : i32
    return %c0_i32, %c0_i32_0 : i32, i32
  }
  func.func @transform_7(%arg0: i32) -> (i32, i32) {
    %c0_i32 = arith.constant 0 : i32
    %c0_i32_0 = arith.constant 0 : i32
    return %c0_i32, %arg0 : i32, i32
  }
}

</mosaic_0001>

<bundles_post_ra>
// kernel: tpu_custom_call.1
= control target key start
LH: loop header
LB: loop body
LE: loop exit
PB: predicated region body
PF: predicated region fallthrough
CT: control target
= control target key end

     0   :  { %12 = vsyncpa [#allocation3], 0  ;;  %s1176_s0 = inlined_call_operand.vmem [shape: f32[4,512], index: 0, kind: input, shape index: {}]   ;;  %s1177_s1 = inlined_call_operand.vmem [shape: f32[32,4], index: 1, kind: input, shape index: {}]   ;;  %s1178_s2 = inlined_call_operand.vmem [shape: f32[32,1], index: 2, kind: input, shape index: {}]   ;;  %s1179_s3 = inlined_call_operand.vmem [shape: f32[40,32], index: 3, kind: input, shape index: {}]   ;;  %s1180_s4 = inlined_call_operand.vmem [shape: f32[40,1], index: 4, kind: input, shape index: {}]   ;;  %s1181_s5 = inlined_call_operand.vmem [shape: f32[16,32], index: 5, kind: input, shape index: {}]   ;;  %s1182_s6 = inlined_call_operand.vmem [shape: f32[16,1], index: 6, kind: input, shape index: {}]   ;;  %s1183_s7 = inlined_call_operand.hbm [shape: f32[56,512], index: 7, kind: output, shape index: {}]  }
   0x1   :  { %14 = vsyncpa [#allocation3 + $0x1], 0  ;;  %s965_s24 = smov 0   ;;  %s967_s25 = smov 0  }
   0x2   :  { %s969_s26 = smov 0   ;;  %s971_s27 = smov 0  }
   0x3 LB: > { %s986_s28 = sadd.s32 4294967295, %s917_s27   ;;  %s767_s29 = sadd.s32 4294967294, %s917_s27   ;;  %s917_s27 = sphi %s971_s27, %s1189_s27   ;;  %s913_s26 = sphi %s969_s26, %s1188_s26   ;;  %s909_s25 = sphi %s967_s25, %s1187_s25   ;;  %s905_s24 = sphi %s965_s24, %s1186_s24  }
   0x4   : > { %s990_s30 = sadd.s32 1, %s917_s27   ;;  %s179_s8 = sadd.s32 1, %s913_s26 }
   0x5   : > { %s176_s9 = ssub.s32 %s917_s27, %s990_s30  ;;  %p189_p0 = scmp.ne.s32.totalorder %s913_s26, %s909_s25 }
   0x6   : > { %p177_p1 = scmp.eq.s32.totalorder %s176_s9, 0  ;;  %p190_p2 = scmp.eq.s32.totalorder %s986_s28, 1 }
   0x7   : > { %p195_p3 = scmp.ne.s32.totalorder %s909_s25, %s905_s24  ;;  %p196_p4 = scmp.eq.s32.totalorder %s767_s29, 1 }
   0x8   : > { %s1001_s10 = scalar_select %p177_p1, %s913_s26, %s179_s8  }
   0x9   : > { %p1003_p5 = por %p190_p2, %p189_p0  ;;  %p1007_p6 = por %p196_p4, %p195_p3 }
   0xa   : > { %p770_p7 = scmp.ge.s32.totalorder %s917_s27, 1  ;;  %p241_p8 = scmp.lt.s32.totalorder %s917_s27, 3 }
   0xc   : > { %p242_p9 = pnand %p770_p7, %p241_p8 }
   0xd   : > { %s771_s13 = sshll.u32 (!%p242_p9), %s986_s28, 1  ;;  %v919_v0 = vmov (!%p242_p9), 0.0   ;;  %v285_v1 = vld [vmem:[%s1178_s2] sm:$0xff] (!%p242_p9)  ;;  %v920_v2 = vmov (!%p242_p9), 0   ;;  %v287_v3 = vld [vmem:[%s1178_s2 + $0x10] sm:$0xff] (!%p242_p9)  ;;  %v286_v4 = vld [vmem:[%s1178_s2 + $0x8] sm:$0xff] (!%p242_p9) }
   0xe   : > { %245 = sbr.rel (%p242_p9) target bundleno = 734 (0x2de), region = 48  ;;  %p274_p10 = scmp.lt.s32.totalorder (!%p242_p9), %s771_s13, 3  ;;  %393 = vmatprep.mubr.f32.mxu0 (!%p242_p9), %v919_v0  ;;  %541 = vmatprep.mubr.f32.mxu1 (!%p242_p9), %v919_v0  ;;  %v288_v5 = vld [vmem:[%s1178_s2 + $0x18] sm:$0xff] (!%p242_p9)  ;;  %vm324_vm0 = vcmask (!%p242_p9), 1043456   ;;  %v431_v8 = vld [vmem:[%s1180_s4] sm:$0xff] (!%p242_p9)  ;;  %vm311_vm1 = vcmask (!%p242_p9), 31744  }
   0xf   : > { %852 = vset.pattern.permute.xlu0 (!%p242_p9), %v920_v2  ;;  %853 = vset.pattern.permute.xlu1 (!%p242_p9), %v920_v2  ;;  %v281_v9 = vld [vmem:[%s1177_s1] sm:$0xff] (!%p242_p9)  ;;  %v432_v10 = vld [vmem:[%s1180_s4 + $0x8] sm:$0xff] (!%p242_p9)  ;;  %v433_v11 = vld [vmem:[%s1180_s4 + $0x10] sm:$0xff] (!%p242_p9)  ;;  %vm461_vm2 = vcmask (!%p242_p9), 261120   ;;  %s270_s17 = sand.u32 (!%p242_p9), 1, %s909_s25   ;;  %s790_s23 = sshll.u32 (!%p242_p9), %s986_s28, 8 }
  0x10   : > { %291 = vperm.xlu0 (!%p242_p9), %852, %v285_v1   ;;  %301 = vperm.xlu1 (!%p242_p9), %853, %v287_v3   ;;  %v282_v12 = vld [vmem:[%s1177_s1 + $0x8] sm:$0xff] (!%p242_p9)  ;;  %v434_v13 = vld [vmem:[%s1180_s4 + $0x18] sm:$0xff] (!%p242_p9)  ;;  %v435_v14 = vld [vmem:[%s1180_s4 + $0x20] sm:$0xff] (!%p242_p9)  ;;  %s1127_s14 = scalar_lea.hbm (!%p242_p9), %s1183_s7, %s790_s23  ;;  %s1135_s28 = scalar_lea.sflag (!%p242_p9), [#allocation3], %s270_s17 }
  0x11   : > { %v283_v15 = vld [vmem:[%s1177_s1 + $0x10] sm:$0xff] (!%p242_p9)  ;;  %v582_v16 = vld [vmem:[%s1182_s6] sm:$0xff] (!%p242_p9)  ;;  %v583_v17 = vld [vmem:[%s1182_s6 + $0x8] sm:$0xff] (!%p242_p9)  ;;  %s921_s16 = smov (!%p242_p9), [#allocation2]  }
  0x12   : > { %v284_v18 = vld [vmem:[%s1177_s1 + $0x18] sm:$0xff] (!%p242_p9)  ;;  %v426_v51 = vld [vmem:[%s1179_s3] sm:$0xff] (!%p242_p9)  ;;  %v427_v52 = vld [vmem:[%s1179_s3 + $0x8] sm:$0xff] (!%p242_p9) }
  0x13   : > { %v428_v53 = vld [vmem:[%s1179_s3 + $0x10] sm:$0xff] (!%p242_p9)  ;;  %v429_v54 = vld [vmem:[%s1179_s3 + $0x18] sm:$0xff] (!%p242_p9)  ;;  %v430_v55 = vld [vmem:[%s1179_s3 + $0x20] sm:$0xff] (!%p242_p9) }
  0x14   : > { %296 = vperm.xlu0 (!%p242_p9), %852, %v286_v4   ;;  %306 = vperm.xlu1 (!%p242_p9), %853, %v288_v5  }
  0x15   : > { %s1191_s13 = smov (!%p274_p10, %s771_s13), 3 }
  0x16   : > { %s772_s22 = sshll.u32 %s1191_s13, 2  ;;  %s807_s13 = smul.u32 112, %s270_s17 }
  0x17   : > { %s277_s8 = scalar_lea.vmem %s1176_s0, %s772_s22 }
  0x18   : > { %v280_v6 = vld [vmem:[%s277_s8] sm:$0xff]  ;;  %438 = vperm.xlu0 %852, %v431_v8   ;;  %443 = vperm.xlu1 %853, %v432_v10   ;;  %s1099_s18 = scalar_lea.vmem [#allocation2], %s807_s13  ;;  %s859_s13 = sshll.u32 %s921_s16, 4  ;;  %s860_s13 = int_to_ptr.vmem [resolvable:$false] %s859_s13 }
  0x19   : > { %v310_v7 = vcombine.high %v280_v6, %v280_v6  ;;  %s705_s29 = sshll.u32 %s1099_s18, 4  ;;  %s861_s19 = scalar_lea.vmem %s860_s13, 3584  ;;  %s1129_s29 = int_to_ptr.vmem [resolvable:$true] %s705_s29 }
  0x1a   : > { %s855_s15 = scalar_lea.vmem %s1129_s29, 1792  ;;  %p862_p0 = scmp.lt.s32.totalorder %s1129_s29, %s860_s13 }
  0x1b   : > { %773 = vmatprep.subr.msk.mxu0 %vm324_vm0, %v310_v7  ;;  %p856_p11 = scmp.ne.s32.totalorder %s1129_s29, %s855_s15  ;;  %p863_p1 = scmp.lt.s32.totalorder %s861_s19, %s855_s15 }
  0x1c   : > { %774 = vmatpush1.msk.msra.mxu0 %vm324_vm0, %v280_v6  ;;  %448 = vperm.xlu0 %852, %v433_v11  }
  0x1d   : > { %775 = vmatmul.mubr.msk.f32.vlgmr.msra.gmra.mrb[0].mxu0 %vm311_vm1, %v281_v9  ;;  %453 = vperm.xlu1 %853, %v434_v13   ;;  %p857_p12 = pnand %p856_p11, %p1003_p5  ;;  %p864_p2 = por %p863_p1, %p862_p0 }
  0x1e   : > { %399 = vmatprep.mubr.f32.mxu0 %v919_v0 }
  0x1f   : > { %p858_p13 = pneg %p857_p12 }
  0x20   : > { %458 = vperm.xlu0 %852, %v435_v14  }
  0x21   : > { %776 = vmatmul.mubr.msk.f32.gmra.mrb[2].mxu0 %vm311_vm1, %v282_v12  ;;  %586 = vperm.xlu1 %853, %v582_v16   ;;  %p865_p3 = pnand %p864_p2, %p858_p13 }
  0x22   : > { %405 = vmatprep.mubr.f32.mxu0 %v919_v0 }
  0x24   : > { %591 = vperm.xlu0 %852, %v583_v17  }
  0x25   : > { %777 = vmatmul.mubr.msk.f32.gmra.mrb[4].mxu0 %vm311_vm1, %v283_v15 }
  0x26   : > { %411 = vmatprep.mubr.f32.mxu0 %v919_v0 }
  0x29   : > { %778 = vmatmul.mubr.msk.f32.gmra.mrb[6].mxu0 %vm311_vm1, %v284_v18 }
  0x2a   : > { %664 = vmatprep.mubr.f32.mxu0 %v919_v0 }
  0x8f   : > { %v292_v19 = vpop.permute.xlu0 %291  ;;  %v302_v28 = vpop.permute.xlu1 %301 }
  0x93   : > { %v297_v23 = vpop.permute.xlu0 %296  ;;  %v307_v39 = vpop.permute.xlu1 %306 }
  0x97   : > { %v439_v56 = vpop.permute.xlu0 %438  ;;  %v444_v62 = vpop.permute.xlu1 %443 }
  0x9b   : > { %v449_v6 = vpop.permute.xlu0 %448 }
  0x9c   : > { %v454_v15 = vpop.permute.xlu1 %453 }
  0xf0   : > { %v395_v20 = vpop.f32.mrb[0].mxu0 }
  0xf1   : > { %v397_v21 = vpop.f32.mrb[1].mxu0  ;;  %v396_v22 = vadd.f32 %v395_v20, %v292_v19 }
  0xf2   : > { %v398_v24 = vadd.f32 %v397_v21, %v292_v19 }
  0xf3   : > { %v418_v30 = vmax.f32 %v396_v22, 0.0  ;;  %v459_v22 = vpop.permute.xlu0 %458 }
  0xf4   : > { %v401_v25 = vpop.f32.mrb[2].mxu0  ;;  %v419_v32 = vmax.f32 %v398_v24, 0.0 }
  0xf5   : > { %v402_v26 = vadd.f32 %v401_v25, %v297_v23  ;;  %v403_v27 = vpop.f32.mrb[3].mxu0 }
  0xf6   : > { %v404_v29 = vadd.f32 %v403_v27, %v297_v23 }
  0xf7   : > { %v420_v31 = vmax.f32 %v402_v26, 0.0 }
  0xf8   : > { %v421_v33 = vmax.f32 %v404_v29, 0.0  ;;  %v407_v34 = vpop.f32.mrb[4].mxu0 }
  0xf9   : > { %v409_v35 = vpop.f32.mrb[5].mxu0  ;;  %v793_v36 = vpack.c.bf16 %v420_v31, %v418_v30  ;;  %v408_v38 = vadd.f32 %v407_v34, %v302_v28  ;;  %v580_v30 = vld [vmem:[%s1181_s5] sm:$0xff]  ;;  %v581_v31 = vld [vmem:[%s1181_s5 + $0x8] sm:$0xff] }
  0xfa   : > { %v791_v37 = vpack.c.bf16 %v421_v33, %v419_v32  ;;  %v410_v40 = vadd.f32 %v409_v35, %v302_v28  ;;  %v587_v32 = vpop.permute.xlu1 %586 }
  0xfb   : > { %v422_v45 = vmax.f32 %v408_v38, 0.0 }
  0xfc   : > { %v413_v41 = vpop.f32.mrb[6].mxu0  ;;  %792 = vmatprep.subr.bf16.mxu1 %v791_v37  ;;  %v423_v47 = vmax.f32 %v410_v40, 0.0  ;;  %v592_v37 = vpop.permute.xlu0 %591 }
  0xfd   : > { %v414_v42 = vadd.f32 %v413_v41, %v307_v39  ;;  %v415_v43 = vpop.f32.mrb[7].mxu0  ;;  %794 = vmatpush1.bf16.msra.mxu1 %v793_v36 }
  0xfe   : > { %v416_v44 = vadd.f32 %v415_v43, %v307_v39 }
  0xff   : > { %v424_v46 = vmax.f32 %v414_v42, 0.0 }
 0x100   : > { %v425_v48 = vmax.f32 %v416_v44, 0.0 }
 0x101   : > { %v797_v49 = vpack.c.bf16 %v424_v46, %v422_v45 }
 0x102   : > { %v795_v50 = vpack.c.bf16 %v425_v48, %v423_v47 }
 0x104   : > { %796 = vmatprep.subr.bf16.mxu1 %v795_v50 }
 0x105   : > { %798 = vmatpush1.bf16.msra.mxu1 %v797_v49 }
 0x108   : > { %779 = vmatmul.mubr.msk.f32.vlgmr.msra.gmra.mrb[0].mxu1 %vm461_vm2, %v426_v51 }
 0x109   : > { %547 = vmatprep.mubr.f32.mxu1 %v919_v0 }
 0x10c   : > { %780 = vmatmul.mubr.msk.f32.gmra.mrb[2].mxu1 %vm461_vm2, %v427_v52 }
 0x10d   : > { %553 = vmatprep.mubr.f32.mxu1 %v919_v0 }
 0x110   : > { %781 = vmatmul.mubr.msk.f32.gmra.mrb[4].mxu1 %vm461_vm2, %v428_v53 }
 0x111   : > { %559 = vmatprep.mubr.f32.mxu1 %v919_v0 }
 0x114   : > { %782 = vmatmul.mubr.msk.f32.gmra.mrb[6].mxu1 %vm461_vm2, %v429_v54 }
 0x115   : > { %565 = vmatprep.mubr.f32.mxu1 %v919_v0 }
 0x118   : > { %783 = vmatmul.mubr.msk.f32.gmra.mrb[8].mxu1 %vm461_vm2, %v430_v55 }
 0x1db   : > { %v543_v57 = vpop.f32.mrb[0].mxu1 }
 0x1dc   : > { %v544_v58 = vadd.f32 %v543_v57, %v439_v56  ;;  %v545_v59 = vpop.f32.mrb[1].mxu1 }
 0x1dd   : > { %v546_v60 = vadd.f32 %v545_v59, %v439_v56 }
 0x1de   : > { %v572_v61 = vmax.f32 %v544_v58, 0.0 }
 0x1df   : > { %v573_v63 = vmax.f32 %v546_v60, 0.0  ;;  %v549_v1 = vpop.f32.mrb[2].mxu1 }
 0x1e0   : > { %677 = vst [vmem:[%s1099_s18] sm:$0xff] %v572_v61  ;;  %v550_v2 = vadd.f32 %v549_v1, %v444_v62  ;;  %v551_v3 = vpop.f32.mrb[3].mxu1 }
 0x1e1   : > { %678 = vst [vmem:[%s1099_s18 + $0x8] sm:$0xff] %v573_v63  ;;  %v552_v4 = vadd.f32 %v551_v3, %v444_v62 }
 0x1e2   : > { %v574_v5 = vmax.f32 %v550_v2, 0.0 }
 0x1e3   : > { %v575_v7 = vmax.f32 %v552_v4, 0.0  ;;  %v555_v8 = vpop.f32.mrb[4].mxu1 }
 0x1e4   : > { %v801_v9 = vpack.c.bf16 %v574_v5, %v572_v61  ;;  %679 = vst [vmem:[%s1099_s18 + $0x10] sm:$0xff] %v574_v5  ;;  %v556_v10 = vadd.f32 %v555_v8, %v449_v6  ;;  %v557_v11 = vpop.f32.mrb[5].mxu1 }
 0x1e5   : > { %v799_v12 = vpack.c.bf16 %v575_v7, %v573_v63  ;;  %680 = vst [vmem:[%s1099_s18 + $0x18] sm:$0xff] %v575_v7  ;;  %v558_v13 = vadd.f32 %v557_v11, %v449_v6 }
 0x1e6   : > { %v576_v14 = vmax.f32 %v556_v10, 0.0 }
 0x1e7   : > { %v577_v16 = vmax.f32 %v558_v13, 0.0  ;;  %v561_v17 = vpop.f32.mrb[6].mxu1  ;;  %800 = vmatprep.subr.bf16.mxu0 %v799_v12 }
 0x1e8   : > { %681 = vst [vmem:[%s1099_s18 + $0x20] sm:$0xff] %v576_v14  ;;  %v562_v18 = vadd.f32 %v561_v17, %v454_v15  ;;  %v563_v19 = vpop.f32.mrb[7].mxu1  ;;  %802 = vmatpush1.bf16.msra.mxu0 %v801_v9 }
 0x1e9   : > { %682 = vst [vmem:[%s1099_s18 + $0x28] sm:$0xff] %v577_v16  ;;  %v564_v20 = vadd.f32 %v563_v19, %v454_v15 }
 0x1ea   : > { %v578_v21 = vmax.f32 %v562_v18, 0.0 }
 0x1eb   : > { %v579_v23 = vmax.f32 %v564_v20, 0.0  ;;  %v567_v24 = vpop.f32.mrb[8].mxu1 }
 0x1ec   : > { %v805_v25 = vpack.c.bf16 %v578_v21, %v576_v14  ;;  %683 = vst [vmem:[%s1099_s18 + $0x30] sm:$0xff] %v578_v21  ;;  %v568_v26 = vadd.f32 %v567_v24, %v459_v22  ;;  %v569_v27 = vpop.f32.mrb[9].mxu1 }
 0x1ed   : > { %v803_v28 = vpack.c.bf16 %v579_v23, %v577_v16  ;;  %684 = vst [vmem:[%s1099_s18 + $0x38] sm:$0xff] %v579_v23  ;;  %v570_v29 = vadd.f32 %v569_v27, %v459_v22 }
 0x1ee   : > { %685 = vst [vmem:[%s1099_s18 + $0x40] sm:$0xff] %v568_v26 }
 0x1ef   : > { %686 = vst [vmem:[%s1099_s18 + $0x48] sm:$0xff] %v570_v29  ;;  %804 = vmatprep.subr.bf16.mxu0 %v803_v28 }
 0x1f0   : > { %806 = vmatpush1.bf16.msra.mxu0 %v805_v25 }
 0x1f3   : > { %784 = vmatmul.mubr.msk.f32.vlgmr.msra.gmra.mrb[8].mxu0 %vm461_vm2, %v580_v30 }
 0x1f4   : > { %670 = vmatprep.mubr.f32.mxu0 %v919_v0 }
 0x1f7   : > { %785 = vmatmul.mubr.msk.f32.gmra.mrb[10].mxu0 %vm461_vm2, %v581_v31 }
 0x2c6   : > { %v666_v33 = vpop.f32.mrb[8].mxu0 }
 0x2c7   : > { %v667_v34 = vadd.f32 %v666_v33, %v587_v32  ;;  %v668_v35 = vpop.f32.mrb[9].mxu0 }
 0x2c8   : > { %v669_v36 = vadd.f32 %v668_v35, %v587_v32 }
 0x2c9   : > { %687 = vst [vmem:[%s1099_s18 + $0x50] sm:$0xff] %v667_v34 }
 0x2ca   : > { %688 = vst [vmem:[%s1099_s18 + $0x58] sm:$0xff] %v669_v36  ;;  %v672_v0 = vpop.f32.mrb[10].mxu0 }
 0x2cb   : > { %v673_v38 = vadd.f32 %v672_v0, %v592_v37  ;;  %v674_v39 = vpop.f32.mrb[11].mxu0 }
 0x2cc   : > { %v675_v40 = vadd.f32 %v674_v39, %v592_v37 }
 0x2cd   : > { %689 = vst [vmem:[%s1099_s18 + $0x60] sm:$0xff] %v673_v38 }
 0x2ce   : > { %690 = vst [vmem:[%s1099_s18 + $0x68] sm:$0xff] %v675_v40 }
 0x2cf   : > { %868 = shalt.err (!%p865_p3)
}
 0x2d0   : > { %s869_s17 = scalar_lea.hbm %s1127_s14, 1792  ;;  %s873_s21 = scalar_lea.hbm %s1183_s7, 3584 }
 0x2d1   : > { %p870_p4 = scmp.ne.s32.totalorder %s1127_s14, %s869_s17  ;;  %p874_p9 = scmp.lt.u32.totalorder %s1127_s14, %s1183_s7 }
 0x2d2   : > { %p875_p10 = scmp.lt.u32.totalorder %s873_s21, %s869_s17  ;;  %p877_p12 = scmp.lt.u32.totalorder %s869_s17, %s1127_s14 }
 0x2d3   : > { %p871_p7 = pnand %p870_p4, %p1003_p5 }
 0x2d4   : > { %p876_p11 = por %p875_p10, %p874_p9 }
 0x2d5   : > { %p872_p8 = pneg %p871_p7 }
 0x2d6   : > { %p878_p13 = por %p877_p12, %p876_p11 }
 0x2d8   : > { %p879_p0 = pnand %p878_p13, %p872_p8 }
 0x2da   : > { %882 = shalt.err (!%p879_p0)
}
 0x2db   : > { %s922_s8 = smov 256   ;;  %s923_s9 = smov 512  }
 0x2dc   : > { %s924_s15 = smov 16  }
 0x2dd   : > { %808 = dma.vmem_to_hbm [thread:$0]  (%p1003_p5), %s1129_s29, 1792, %s1127_s14, %s1135_s28, %s922_s8, %s923_s9, %s924_s15  }
 0x2de PF: > { %p814_p1 = scmp.ge.s32.totalorder %s917_s27, 2  ;;  %s720_s16 = sand.u32 1, %s905_s24  }
 0x2df   : > { %s721_s13 = scalar_lea.sflag [#allocation3], %s720_s16 }
 0x2e0   : > { %p811_p2 = pnand %p814_p1, %p1007_p6 }
 0x2e2   : > { %900 = dma.done.wait (!%p811_p2), %s721_s13, 1792  }
 0x2e3   : > { %902 = vsyncadd (!%p811_p2), %s721_s13, 4294965504  ;;  %p17_p3 = scmp.ge.s32.totalorder %s990_s30, 4   ;;  %s1186_s24 = smov %s909_s25 }
 0x2e4   : > { %s1187_s25 = smov %s913_s26  ;;  %s1188_s26 = smov %s1001_s10 }
 0x2e5   : > { %s1189_s27 = smov %s990_s30  ;;  %19 = sbr.rel (!%p17_p3) target bundleno = 3 (0x3), region = 83 }
 0x2ec   :  { %726 = vsyncpa [#allocation3], 1 }
 0x2ed   :  { %728 = vsyncpa [#allocation3 + $0x1], 1 }

</bundles_post_ra>
